<compile_context>
chip_gen: v6e
topology: v6e:2x2x1
jax: 0.10.0
libtpu: 0.0.40
codegen_flags: <defaults>
</compile_context>

<pallas_src>
import jax
import jax.numpy as jnp
from jax.experimental import pallas as pl
from jax.experimental.pallas import tpu as pltpu


def _pick_tile_h(H, C, W, itemsize):
    """Largest H-band that divides H, is a multiple of 8, and keeps one input
    block under ~1 MiB (so 2 inputs x 2 pipeline buffers stay well inside the
    default scoped VMEM on every TPU generation)."""
    budget = 1 << 20
    for t in (256, 128, 64, 32, 16, 8):
        if H % t == 0 and C * t * W * itemsize <= budget:
            return t
    if H % 8 == 0:
        return 8
    # TODO(synk): H not a multiple of 8 falls back to a full-height block.
    return H


def _make_kernel(C, tH, W, n_htiles):
    last_band_is_self_mirrored = (n_htiles % 2 == 1)

    def kernel(f_ref, m_ref, out_ref, jw_ref, jh_ref, acc_ref):
        j = pl.program_id(1)

        @pl.when(j == 0)
        def _():
            acc_ref[...] = jnp.zeros_like(acc_ref)
            # Exchange (anti-identity) matrices used to realize the flips on
            # the MXU.  Built once per batch item; never streamed from HBM.
            pw = jax.lax.broadcasted_iota(jnp.int32, (W, W), 0)
            qw = jax.lax.broadcasted_iota(jnp.int32, (W, W), 1)
            jw_ref[...] = (pw + qw == W - 1).astype(jnp.float32)
            ph = jax.lax.broadcasted_iota(jnp.int32, (tH, tH), 0)
            qh = jax.lax.broadcasted_iota(jnp.int32, (tH, tH), 1)
            jh_ref[...] = (ph + qh == tH - 1).astype(jnp.float32)

        f = f_ref[...].astype(jnp.float32)   # (1, C, tH, W)  band j
        m = m_ref[...].astype(jnp.float32)   # (1, C, tH, W)  mirror band
        jw = jw_ref[...]                     # (W, W)  reverses lanes (W)
        jh = jh_ref[...]                     # (tH, tH) reverses rows (H)

        rl_f = jnp.zeros((tH, W), jnp.float32)
        rl_m = jnp.zeros((tH, W), jnp.float32)
        ud = jnp.zeros((tH, W), jnp.float32)
        for c in range(C):                   # C is tiny (2-4); unrolled
            fc = f[0, c]                     # (tH, W)
            mc = m[0, c]                     # (tH, W)
            d_rl_f = jnp.dot(fc, jw, preferred_element_type=jnp.float32) - fc
            d_rl_m = jnp.dot(mc, jw, preferred_element_type=jnp.float32) - mc
            d_ud = jnp.dot(jh, mc, preferred_element_type=jnp.float32) - fc
            rl_f += d_rl_f * d_rl_f
            rl_m += d_rl_m * d_rl_m
            ud += d_ud * d_ud

        # RL contribution of band j and of its mirror band, plus the UD
        # contribution of both (they are equal by symmetry, hence the 2x).
        contrib = jnp.sqrt(rl_f) + jnp.sqrt(rl_m) + 2.0 * jnp.sqrt(ud)

        if last_band_is_self_mirrored:
            # Odd number of bands: the last visited band is its own mirror,
            # so the expression above double-counts it -> halve.
            scale = jnp.where(j == pl.num_programs(1) - 1,
                              jnp.float32(0.5), jnp.float32(1.0))
        else:
            scale = jnp.float32(1.0)

        acc_ref[...] += scale * contrib      # pure VPU adds per step

        @pl.when(j == pl.num_programs(1) - 1)
        def _():
            # Single cross-sublane reduce per batch item.
            out_ref[...] = jnp.sum(acc_ref[...], axis=0, keepdims=True)[None]

    return kernel


def sym_loss(flow: jax.Array) -> jax.Array:
    """flow: (N, C, H, W). Returns scalar float32 loss (matches SymLoss.forward)."""
    N, C, H, W = flow.shape
    tH = _pick_tile_h(H, C, W, flow.dtype.itemsize)
    n_htiles = H // tH
    n_half = (n_htiles + 1) // 2

    band = pl.BlockSpec((1, C, tH, W), lambda i, j: (i, 0, j, 0))
    mirror = pl.BlockSpec((1, C, tH, W), lambda i, j: (i, 0, n_htiles - 1 - j, 0))

    out = pl.pallas_call(
        _make_kernel(C, tH, W, n_htiles),
        out_shape=jax.ShapeDtypeStruct((N, 1, W), jnp.float32),
        grid_spec=pltpu.PrefetchScalarGridSpec(
            num_scalar_prefetch=0,
            grid=(N, n_half),
            in_specs=[band, mirror],
            out_specs=pl.BlockSpec((1, 1, W), lambda i, j: (i, 0, 0)),
            scratch_shapes=[
                pltpu.VMEM((W, W), jnp.float32),    # W-exchange matrix
                pltpu.VMEM((tH, tH), jnp.float32),  # row-exchange matrix
                pltpu.VMEM((tH, W), jnp.float32),   # vector accumulator
            ],
        ),
        compiler_params=pltpu.CompilerParams(
            dimension_semantics=("parallel", "arbitrary"),
            vmem_limit_bytes=32 * 1024 * 1024,
        ),
    )(flow, flow)

    # Each mean divides by N*H*W; the combined sum uses the same divisor.
    return (jnp.sum(out) / jnp.float32(N * H * W)).astype(jnp.float32)


def _sym_loss_ref(flow: jax.Array) -> jax.Array:
    flow = flow.astype(jnp.float32)
    flow_rl = flow[:, :, :, ::-1]
    flow_ud = flow[:, :, ::-1, :]
    loss_rl = jnp.sqrt(jnp.sum((flow_rl - flow) ** 2, axis=1)).mean()
    loss_ud = jnp.sqrt(jnp.sum((flow_ud - flow) ** 2, axis=1)).mean()
    return loss_rl + loss_ud


if __name__ == "__main__":
    key = jax.random.PRNGKey(0)
    shapes = [
        (2, 4, 16, 16),   # primary test shape (NCHW flow field)
        (2, 2, 48, 16),   # odd number of H bands -> mirror path + middle band
        (1, 2, 15, 13),   # H not a multiple of 8 -> full-height block fallback
    ]
    for idx, shape in enumerate(shapes):
        k = jax.random.fold_in(key, idx)
        flow = jax.random.normal(k, shape, dtype=jnp.float32)
        out = jax.block_until_ready(sym_loss(flow))
        ref = jax.block_until_ready(_sym_loss_ref(flow))
        assert jnp.allclose(out, ref, rtol=1e-5, atol=1e-5), (shape, out, ref)
    print("KERNEL_OK")
</pallas_src>

<mosaic_0001>
module attributes {stable_mosaic.version = 11 : i64} {
  func.func @kernel(%arg0: i32, %arg1: i32, %arg2: memref<1x4x16x16xf32, #tpu.memory_space<vmem>>, %arg3: memref<1x4x16x16xf32, #tpu.memory_space<vmem>>, %arg4: memref<1x1x16xf32, #tpu.memory_space<vmem>>, %arg5: memref<16x16xf32, #tpu.memory_space<vmem>>, %arg6: memref<16x16xf32, #tpu.memory_space<vmem>>, %arg7: memref<16x16xf32, #tpu.memory_space<vmem>>) attributes {dimension_semantics = [#tpu.dimension_semantics<parallel>, #tpu.dimension_semantics<arbitrary>], iteration_bounds = array<i64: 2, 1>, scalar_prefetch = 0 : i64, scratch_operands = 3 : i64, tpu.core_type = #tpu.core_type<tc>, window_params = [{transform_indices = @transform_0, window_bounds = array<i64: 1, 4, 16, 16>}, {transform_indices = @transform_1, window_bounds = array<i64: 1, 4, 16, 16>}, {transform_indices = @transform_2, window_bounds = array<i64: 1, 1, 16>}]} {
    %c0_i32 = arith.constant 0 : i32
    %0 = arith.cmpi eq, %arg1, %c0_i32 : i32
    %1 = arith.extui %0 : i1 to i32
    %c0_i32_0 = arith.constant 0 : i32
    %2 = arith.cmpi ne, %1, %c0_i32_0 : i32
    scf.if %2 {
      %cst_36 = arith.constant 0.000000e+00 : f32
      %91 = vector.broadcast %cst_36 : f32 to vector<16x16xf32>
      %c0_37 = arith.constant 0 : index
      %c0_38 = arith.constant 0 : index
      %92 = vector.load %arg7[%c0_37, %c0_38] : memref<16x16xf32, #tpu.memory_space<vmem>>, vector<16x16xf32>
      tpu.vector_store %arg7[%c0_37, %c0_38], %91 {strides = array<i32>} : memref<16x16xf32, #tpu.memory_space<vmem>>, vector<16x16xf32>,
      %93 = tpu.iota {dimensions = array<i32: 0>} : vector<16x16xi32>
      %94 = tpu.iota {dimensions = array<i32: 1>} : vector<16x16xi32>
      %95 = arith.addi %93, %94 : vector<16x16xi32>
      %c15_i32 = arith.constant 15 : i32
      %96 = vector.broadcast %c15_i32 : i32 to vector<16x16xi32>
      %97 = arith.cmpi eq, %95, %96 : vector<16x16xi32>
      %98 = arith.extui %97 : vector<16x16xi1> to vector<16x16xi32>
      %99 = arith.sitofp %98 : vector<16x16xi32> to vector<16x16xf32>
      %c0_39 = arith.constant 0 : index
      %c0_40 = arith.constant 0 : index
      %100 = vector.load %arg5[%c0_39, %c0_40] : memref<16x16xf32, #tpu.memory_space<vmem>>, vector<16x16xf32>
      tpu.vector_store %arg5[%c0_39, %c0_40], %99 {strides = array<i32>} : memref<16x16xf32, #tpu.memory_space<vmem>>, vector<16x16xf32>,
      %101 = tpu.iota {dimensions = array<i32: 0>} : vector<16x16xi32>
      %102 = tpu.iota {dimensions = array<i32: 1>} : vector<16x16xi32>
      %103 = arith.addi %101, %102 : vector<16x16xi32>
      %c15_i32_41 = arith.constant 15 : i32
      %104 = vector.broadcast %c15_i32_41 : i32 to vector<16x16xi32>
      %105 = arith.cmpi eq, %103, %104 : vector<16x16xi32>
      %106 = arith.extui %105 : vector<16x16xi1> to vector<16x16xi32>
      %107 = arith.sitofp %106 : vector<16x16xi32> to vector<16x16xf32>
      %c0_42 = arith.constant 0 : index
      %c0_43 = arith.constant 0 : index
      %108 = vector.load %arg6[%c0_42, %c0_43] : memref<16x16xf32, #tpu.memory_space<vmem>>, vector<16x16xf32>
      tpu.vector_store %arg6[%c0_42, %c0_43], %107 {strides = array<i32>} : memref<16x16xf32, #tpu.memory_space<vmem>>, vector<16x16xf32>,
    } else {
    }
    %c0 = arith.constant 0 : index
    %c0_1 = arith.constant 0 : index
    %c0_2 = arith.constant 0 : index
    %c0_3 = arith.constant 0 : index
    %3 = vector.load %arg2[%c0, %c0_1, %c0_2, %c0_3] : memref<1x4x16x16xf32, #tpu.memory_space<vmem>>, vector<1x4x16x16xf32>
    %c0_4 = arith.constant 0 : index
    %c0_5 = arith.constant 0 : index
    %c0_6 = arith.constant 0 : index
    %c0_7 = arith.constant 0 : index
    %4 = vector.load %arg3[%c0_4, %c0_5, %c0_6, %c0_7] : memref<1x4x16x16xf32, #tpu.memory_space<vmem>>, vector<1x4x16x16xf32>
    %c0_8 = arith.constant 0 : index
    %c0_9 = arith.constant 0 : index
    %5 = vector.load %arg5[%c0_8, %c0_9] : memref<16x16xf32, #tpu.memory_space<vmem>>, vector<16x16xf32>
    %c0_10 = arith.constant 0 : index
    %c0_11 = arith.constant 0 : index
    %6 = vector.load %arg6[%c0_10, %c0_11] : memref<16x16xf32, #tpu.memory_space<vmem>>, vector<16x16xf32>
    %cst = arith.constant 0.000000e+00 : f32
    %7 = vector.broadcast %cst : f32 to vector<16x16xf32>
    %cst_12 = arith.constant 0.000000e+00 : f32
    %8 = vector.broadcast %cst_12 : f32 to vector<16x16xf32>
    %cst_13 = arith.constant 0.000000e+00 : f32
    %9 = vector.broadcast %cst_13 : f32 to vector<16x16xf32>
    %10 = vector.extract_strided_slice %3 {offsets = [0, 0, 0, 0], sizes = [1, 1, 16, 16], strides = [1, 1, 1, 1]} : vector<1x4x16x16xf32> to vector<1x1x16x16xf32>
    %11 = vector.shape_cast %10 : vector<1x1x16x16xf32> to vector<16x16xf32>
    %12 = vector.extract_strided_slice %4 {offsets = [0, 0, 0, 0], sizes = [1, 1, 16, 16], strides = [1, 1, 1, 1]} : vector<1x4x16x16xf32> to vector<1x1x16x16xf32>
    %13 = vector.shape_cast %12 : vector<1x1x16x16xf32> to vector<16x16xf32>
    %cst_14 = arith.constant dense<0.000000e+00> : vector<16x16xf32>
    %14 = tpu.matmul %11, %5, %cst_14 {dimension_numbers = #tpu.dot_dimension_numbers<[1], [0], [0], [1], [0, 0, 1, 1], [], []>} : vector<16x16xf32>, vector<16x16xf32>, vector<16x16xf32> -> vector<16x16xf32>
    %15 = arith.subf %14, %11 : vector<16x16xf32>
    %cst_15 = arith.constant dense<0.000000e+00> : vector<16x16xf32>
    %16 = tpu.matmul %13, %5, %cst_15 {dimension_numbers = #tpu.dot_dimension_numbers<[1], [0], [0], [1], [0, 0, 1, 1], [], []>} : vector<16x16xf32>, vector<16x16xf32>, vector<16x16xf32> -> vector<16x16xf32>
    %17 = arith.subf %16, %13 : vector<16x16xf32>
    %cst_16 = arith.constant dense<0.000000e+00> : vector<16x16xf32>
    %18 = tpu.matmul %6, %13, %cst_16 {dimension_numbers = #tpu.dot_dimension_numbers<[1], [0], [0], [1], [0, 0, 1, 1], [], []>} : vector<16x16xf32>, vector<16x16xf32>, vector<16x16xf32> -> vector<16x16xf32>
    %19 = arith.subf %18, %11 : vector<16x16xf32>
    %20 = arith.mulf %15, %15 : vector<16x16xf32>
    %21 = arith.addf %7, %20 : vector<16x16xf32>
    %22 = arith.mulf %17, %17 : vector<16x16xf32>
    %23 = arith.addf %8, %22 : vector<16x16xf32>
    %24 = arith.mulf %19, %19 : vector<16x16xf32>
    %25 = arith.addf %9, %24 : vector<16x16xf32>
    %26 = vector.extract_strided_slice %3 {offsets = [0, 1, 0, 0], sizes = [1, 1, 16, 16], strides = [1, 1, 1, 1]} : vector<1x4x16x16xf32> to vector<1x1x16x16xf32>
    %27 = vector.shape_cast %26 : vector<1x1x16x16xf32> to vector<16x16xf32>
    %28 = vector.extract_strided_slice %4 {offsets = [0, 1, 0, 0], sizes = [1, 1, 16, 16], strides = [1, 1, 1, 1]} : vector<1x4x16x16xf32> to vector<1x1x16x16xf32>
    %29 = vector.shape_cast %28 : vector<1x1x16x16xf32> to vector<16x16xf32>
    %cst_17 = arith.constant dense<0.000000e+00> : vector<16x16xf32>
    %30 = tpu.matmul %27, %5, %cst_17 {dimension_numbers = #tpu.dot_dimension_numbers<[1], [0], [0], [1], [0, 0, 1, 1], [], []>} : vector<16x16xf32>, vector<16x16xf32>, vector<16x16xf32> -> vector<16x16xf32>
    %31 = arith.subf %30, %27 : vector<16x16xf32>
    %cst_18 = arith.constant dense<0.000000e+00> : vector<16x16xf32>
    %32 = tpu.matmul %29, %5, %cst_18 {dimension_numbers = #tpu.dot_dimension_numbers<[1], [0], [0], [1], [0, 0, 1, 1], [], []>} : vector<16x16xf32>, vector<16x16xf32>, vector<16x16xf32> -> vector<16x16xf32>
    %33 = arith.subf %32, %29 : vector<16x16xf32>
    %cst_19 = arith.constant dense<0.000000e+00> : vector<16x16xf32>
    %34 = tpu.matmul %6, %29, %cst_19 {dimension_numbers = #tpu.dot_dimension_numbers<[1], [0], [0], [1], [0, 0, 1, 1], [], []>} : vector<16x16xf32>, vector<16x16xf32>, vector<16x16xf32> -> vector<16x16xf32>
    %35 = arith.subf %34, %27 : vector<16x16xf32>
    %36 = arith.mulf %31, %31 : vector<16x16xf32>
    %37 = arith.addf %21, %36 : vector<16x16xf32>
    %38 = arith.mulf %33, %33 : vector<16x16xf32>
    %39 = arith.addf %23, %38 : vector<16x16xf32>
    %40 = arith.mulf %35, %35 : vector<16x16xf32>
    %41 = arith.addf %25, %40 : vector<16x16xf32>
    %42 = vector.extract_strided_slice %3 {offsets = [0, 2, 0, 0], sizes = [1, 1, 16, 16], strides = [1, 1, 1, 1]} : vector<1x4x16x16xf32> to vector<1x1x16x16xf32>
    %43 = vector.shape_cast %42 : vector<1x1x16x16xf32> to vector<16x16xf32>
    %44 = vector.extract_strided_slice %4 {offsets = [0, 2, 0, 0], sizes = [1, 1, 16, 16], strides = [1, 1, 1, 1]} : vector<1x4x16x16xf32> to vector<1x1x16x16xf32>
    %45 = vector.shape_cast %44 : vector<1x1x16x16xf32> to vector<16x16xf32>
    %cst_20 = arith.constant dense<0.000000e+00> : vector<16x16xf32>
    %46 = tpu.matmul %43, %5, %cst_20 {dimension_numbers = #tpu.dot_dimension_numbers<[1], [0], [0], [1], [0, 0, 1, 1], [], []>} : vector<16x16xf32>, vector<16x16xf32>, vector<16x16xf32> -> vector<16x16xf32>
    %47 = arith.subf %46, %43 : vector<16x16xf32>
    %cst_21 = arith.constant dense<0.000000e+00> : vector<16x16xf32>
    %48 = tpu.matmul %45, %5, %cst_21 {dimension_numbers = #tpu.dot_dimension_numbers<[1], [0], [0], [1], [0, 0, 1, 1], [], []>} : vector<16x16xf32>, vector<16x16xf32>, vector<16x16xf32> -> vector<16x16xf32>
    %49 = arith.subf %48, %45 : vector<16x16xf32>
    %cst_22 = arith.constant dense<0.000000e+00> : vector<16x16xf32>
    %50 = tpu.matmul %6, %45, %cst_22 {dimension_numbers = #tpu.dot_dimension_numbers<[1], [0], [0], [1], [0, 0, 1, 1], [], []>} : vector<16x16xf32>, vector<16x16xf32>, vector<16x16xf32> -> vector<16x16xf32>
    %51 = arith.subf %50, %43 : vector<16x16xf32>
    %52 = arith.mulf %47, %47 : vector<16x16xf32>
    %53 = arith.addf %37, %52 : vector<16x16xf32>
    %54 = arith.mulf %49, %49 : vector<16x16xf32>
    %55 = arith.addf %39, %54 : vector<16x16xf32>
    %56 = arith.mulf %51, %51 : vector<16x16xf32>
    %57 = arith.addf %41, %56 : vector<16x16xf32>
    %58 = vector.extract_strided_slice %3 {offsets = [0, 3, 0, 0], sizes = [1, 1, 16, 16], strides = [1, 1, 1, 1]} : vector<1x4x16x16xf32> to vector<1x1x16x16xf32>
    %59 = vector.shape_cast %58 : vector<1x1x16x16xf32> to vector<16x16xf32>
    %60 = vector.extract_strided_slice %4 {offsets = [0, 3, 0, 0], sizes = [1, 1, 16, 16], strides = [1, 1, 1, 1]} : vector<1x4x16x16xf32> to vector<1x1x16x16xf32>
    %61 = vector.shape_cast %60 : vector<1x1x16x16xf32> to vector<16x16xf32>
    %cst_23 = arith.constant dense<0.000000e+00> : vector<16x16xf32>
    %62 = tpu.matmul %59, %5, %cst_23 {dimension_numbers = #tpu.dot_dimension_numbers<[1], [0], [0], [1], [0, 0, 1, 1], [], []>} : vector<16x16xf32>, vector<16x16xf32>, vector<16x16xf32> -> vector<16x16xf32>
    %63 = arith.subf %62, %59 : vector<16x16xf32>
    %cst_24 = arith.constant dense<0.000000e+00> : vector<16x16xf32>
    %64 = tpu.matmul %61, %5, %cst_24 {dimension_numbers = #tpu.dot_dimension_numbers<[1], [0], [0], [1], [0, 0, 1, 1], [], []>} : vector<16x16xf32>, vector<16x16xf32>, vector<16x16xf32> -> vector<16x16xf32>
    %65 = arith.subf %64, %61 : vector<16x16xf32>
    %cst_25 = arith.constant dense<0.000000e+00> : vector<16x16xf32>
    %66 = tpu.matmul %6, %61, %cst_25 {dimension_numbers = #tpu.dot_dimension_numbers<[1], [0], [0], [1], [0, 0, 1, 1], [], []>} : vector<16x16xf32>, vector<16x16xf32>, vector<16x16xf32> -> vector<16x16xf32>
    %67 = arith.subf %66, %59 : vector<16x16xf32>
    %68 = arith.mulf %63, %63 : vector<16x16xf32>
    %69 = arith.addf %53, %68 : vector<16x16xf32>
    %70 = arith.mulf %65, %65 : vector<16x16xf32>
    %71 = arith.addf %55, %70 : vector<16x16xf32>
    %72 = arith.mulf %67, %67 : vector<16x16xf32>
    %73 = arith.addf %57, %72 : vector<16x16xf32>
    %74 = math.sqrt %69 : vector<16x16xf32>
    %75 = math.sqrt %71 : vector<16x16xf32>
    %76 = arith.addf %74, %75 : vector<16x16xf32>
    %77 = math.sqrt %73 : vector<16x16xf32>
    %cst_26 = arith.constant 2.000000e+00 : f32
    %78 = vector.broadcast %cst_26 : f32 to vector<16x16xf32>
    %79 = arith.mulf %78, %77 : vector<16x16xf32>
    %80 = arith.addf %76, %79 : vector<16x16xf32>
    %c0_i32_27 = arith.constant 0 : i32
    %81 = arith.cmpi eq, %arg1, %c0_i32_27 : i32
    %cst_28 = arith.constant 5.000000e-01 : f32
    %cst_29 = arith.constant 1.000000e+00 : f32
    %82 = arith.select %81, %cst_28, %cst_29 : f32
    %c0_30 = arith.constant 0 : index
    %c0_31 = arith.constant 0 : index
    %83 = vector.load %arg7[%c0_30, %c0_31] : memref<16x16xf32, #tpu.memory_space<vmem>>, vector<16x16xf32>
    %84 = vector.broadcast %82 : f32 to vector<16x16xf32>
    %85 = arith.mulf %84, %80 : vector<16x16xf32>
    %86 = arith.addf %83, %85 : vector<16x16xf32>
    %c0_32 = arith.constant 0 : index
    %c0_33 = arith.constant 0 : index
    %87 = vector.load %arg7[%c0_32, %c0_33] : memref<16x16xf32, #tpu.memory_space<vmem>>, vector<16x16xf32>
    tpu.vector_store %arg7[%c0_32, %c0_33], %86 {strides = array<i32>} : memref<16x16xf32, #tpu.memory_space<vmem>>, vector<16x16xf32>,
    %c0_i32_34 = arith.constant 0 : i32
    %88 = arith.cmpi eq, %arg1, %c0_i32_34 : i32
    %89 = arith.extui %88 : i1 to i32
    %c0_i32_35 = arith.constant 0 : i32
    %90 = arith.cmpi ne, %89, %c0_i32_35 : i32
    scf.if %90 {
      %c0_36 = arith.constant 0 : index
      %c0_37 = arith.constant 0 : index
      %91 = vector.load %arg7[%c0_36, %c0_37] : memref<16x16xf32, #tpu.memory_space<vmem>>, vector<16x16xf32>
      %cst_38 = arith.constant dense<0.000000e+00> : vector<16xf32>
      %92 = vector.multi_reduction <add>, %91, %cst_38 [0] : vector<16x16xf32> to vector<16xf32>
      %93 = vector.shape_cast %92 : vector<16xf32> to vector<1x16xf32>
      %94 = vector.shape_cast %93 : vector<1x16xf32> to vector<1x1x16xf32>
      %c0_39 = arith.constant 0 : index
      %c0_40 = arith.constant 0 : index
      %c0_41 = arith.constant 0 : index
      %95 = vector.load %arg4[%c0_39, %c0_40, %c0_41] : memref<1x1x16xf32, #tpu.memory_space<vmem>>, vector<1x1x16xf32>
      tpu.vector_store %arg4[%c0_39, %c0_40, %c0_41], %94 {strides = array<i32>} : memref<1x1x16xf32, #tpu.memory_space<vmem>>, vector<1x1x16xf32>,
    } else {
    }
    return
  }
  func.func @transform_0(%arg0: i32, %arg1: i32) -> (i32, i32, i32, i32) {
    %c0_i32 = arith.constant 0 : i32
    %c0_i32_0 = arith.constant 0 : i32
    %c0_i32_1 = arith.constant 0 : i32
    return %arg0, %c0_i32, %arg1, %c0_i32_0 : i32, i32, i32, i32
  }
  func.func @transform_1(%arg0: i32, %arg1: i32) -> (i32, i32, i32, i32) {
    %c0_i32 = arith.constant 0 : i32
    %0 = arith.subi %c0_i32, %arg1 : i32
    %c0_i32_0 = arith.constant 0 : i32
    %c0_i32_1 = arith.constant 0 : i32
    %c0_i32_2 = arith.constant 0 : i32
    return %arg0, %c0_i32_0, %0, %c0_i32_1 : i32, i32, i32, i32
  }
  func.func @transform_2(%arg0: i32, %arg1: i32) -> (i32, i32, i32) {
    %c0_i32 = arith.constant 0 : i32
    %c0_i32_0 = arith.constant 0 : i32
    %c0_i32_1 = arith.constant 0 : i32
    return %arg0, %c0_i32, %c0_i32_0 : i32, i32, i32
  }
}

</mosaic_0001>

<bundles_post_ra>
// kernel: tpu_custom_call.1
= control target key start
LH: loop header
LB: loop body
LE: loop exit
PB: predicated region body
PF: predicated region fallthrough
CT: control target
= control target key end

     0   :  { %7 = vsyncpa [#allocation6], 0  ;;  %s2296_s0 = inlined_call_operand.hbm [shape: f32[2,4,16,16], index: 0, kind: input, shape index: {}]   ;;  %s2297_s1 = inlined_call_operand.hbm [shape: f32[2,4,16,16], index: 1, kind: input, shape index: {}]   ;;  %s2298_s2 = inlined_call_operand.hbm [shape: f32[2,1,16], index: 2, kind: output, shape index: {}]  }
   0x1   :  { %9 = vsyncpa [#allocation6 + $0x1], 0 }
   0x2   :  { %10 = vsyncpa [#allocation9], 0 }
   0x3   :  { %12 = vsyncpa [#allocation9 + $0x1], 0 }
   0x4   :  { %13 = vsyncpa [#allocation7], 0 }
   0x5   :  { %15 = vsyncpa [#allocation7 + $0x1], 0  ;;  %s1909_s9 = smov 0   ;;  %s1911_s10 = smov 0  }
   0x6   :  { %s1913_s11 = smov 0   ;;  %s1915_s12 = smov 0  }
   0x7   :  { %s1917_s13 = smov 0   ;;  %s1919_s14 = smov 0  }
   0x8 LB: > { %s1488_s15 = sadd.s32 4294967295, %s1886_s14   ;;  %s1489_s16 = sadd.s32 4294967294, %s1886_s14   ;;  %s1886_s14 = sphi %s1919_s14, %s21_s14   ;;  %s1882_s13 = sphi %s1917_s13, %s2310_s13   ;;  %s1878_s12 = sphi %s1915_s12, %s2309_s12   ;;  %s1874_s11 = sphi %s1913_s11, %s2308_s11   ;;  %s1870_s10 = sphi %s1911_s10, %s2307_s10   ;;  %s1866_s9 = sphi %s1909_s9, %s2306_s9  }
   0x9   : > { %s33_s17 = sadd.s32 1, %s1882_s13  ;;  %s42_s18 = sadd.s32 1, %s1874_s11 }
   0xa   : > { %p35_p0 = scmp.ge.s32.totalorder %s33_s17, 2  ;;  %p49_p1 = scmp.ne.s32.totalorder %s1874_s11, %s1870_s10 }
   0xb   : > { %p50_p2 = scmp.eq.s32.totalorder %s1886_s14, 0  ;;  %p55_p3 = scmp.ne.s32.totalorder %s1870_s10, %s1866_s9 }
   0xc   : > { %s2312_s17 = smov (%p35_p0, %s33_s17), 0  ;;  %p56_p5 = scmp.eq.s32.totalorder %s1488_s15, 0 }
   0xd   : > { %p1950_p4 = por %p50_p2, %p49_p1  ;;  %s37_s20 = ssub.s32 %s1882_s13, %s2312_s17 }
   0xe   : > { %p109_p6 = scmp.eq.s32.totalorder %s1488_s15, 1  ;;  %p40_p7 = scmp.eq.s32.totalorder %s37_s20, 0 }
   0xf   : > { %p1956_p8 = por %p56_p5, %p55_p3  ;;  %p115_p10 = scmp.eq.s32.totalorder %s1489_s16, 1 }
  0x10   : > { %p1960_p9 = por %p109_p6, %p49_p1  ;;  %p1681_p13 = scmp.lt.s32.totalorder %s1886_s14, 2 }
  0x11   : > { %s1965_s23 = scalar_select %p40_p7, %s1874_s11, %s42_s18  }
  0x12   : > { %p1967_p11 = por %p115_p10, %p55_p3  ;;  %s1974_s25 = sand.u32 1, %s1874_s11  }
  0x13   : > { %s1492_s26 = sshll.u32 %s1974_s25, 6  ;;  %s1530_s27 = sshll.u32 %s1882_s13, 10 }
  0x14   : > { %s147_s30 = scalar_lea.hbm %s2296_s0, %s1530_s27  ;;  %s139_s3 = scalar_lea.vmem [#allocation5], %s1492_s26 }
  0x15   : > { %s148_s4 = sshll.u32 %s139_s3, 4  ;;  %p1987_p0 = pnand %p1681_p13, %p1950_p4  ;;  %s149_s4 = int_to_ptr.vmem [resolvable:$true] %s148_s4 }
  0x16   : > { %p1498_p1 = scmp.ge.s32.totalorder %s1886_s14, 1  ;;  %s136_s6 = scalar_lea.sflag [#allocation6], %s1974_s25 }
  0x17   : > { %p1748_p2 = pneg %p1987_p0  ;;  %s1759_s7 = scalar_lea.vmem %s149_s4, 1024 }
  0x18   : > { %p1760_p3 = scmp.ne.s32.totalorder %s149_s4, %s1759_s7  ;;  %s1888_s8 = smov [#allocation5]  }
  0x19   : > { %s1764_s15 = sshll.u32 %s1888_s8, 4  ;;  %s1765_s15 = int_to_ptr.vmem [resolvable:$false] %s1764_s15 }
  0x1a   : > { %p1762_p5 = pnand %p1760_p3, %p1748_p2  ;;  %s1766_s16 = scalar_lea.vmem %s1765_s15, 2048 }
  0x1b   : > { %p1767_p4 = scmp.lt.s32.totalorder %s149_s4, %s1765_s15  ;;  %p1768_p7 = scmp.lt.s32.totalorder %s1766_s16, %s1759_s7 }
  0x1c   : > { %p1763_p6 = pneg %p1762_p5 }
  0x1d   : > { %p1769_p10 = por %p1768_p7, %p1767_p4 }
  0x1f   : > { %p1770_p13 = pnand %p1769_p10, %p1763_p6 }
  0x21   : > { %1773 = shalt.err (!%p1770_p13)
}
  0x22   : > { %s1889_s18 = smov 128   ;;  %s1890_s19 = smov 8  }
  0x23   : > { %1673 = dma.hbm_to_vmem [thread:$0]  (!%p1987_p0), %s147_s30, 1024, %s149_s4, %s136_s6, %s1889_s18, %s1889_s18, %s1890_s19  }
  0x24   : > { %p180_p3 = scmp.lt.s32.totalorder %s1886_s14, 3  ;;  %s171_s29 = scalar_lea.hbm %s2297_s1, %s1530_s27 }
  0x25   : > { %s162_s7 = scalar_lea.vmem [#allocation8], %s1492_s26  ;;  %s159_s15 = scalar_lea.sflag [#allocation9], %s1974_s25 }
  0x26   : > { %p2008_p5 = pnand %p1498_p1, %p180_p3  ;;  %s172_s8 = sshll.u32 %s162_s7, 4  ;;  %s173_s8 = int_to_ptr.vmem [resolvable:$true] %s172_s8 }
  0x27   : > { %s1787_s16 = scalar_lea.vmem %s173_s8, 1024  ;;  %s1891_s30 = smov [#allocation8]  }
  0x28   : > { %p1788_p6 = scmp.ne.s32.totalorder %s173_s8, %s1787_s16  ;;  %s1792_s4 = sshll.u32 %s1891_s30, 4  ;;  %s1793_s4 = int_to_ptr.vmem [resolvable:$false] %s1792_s4 }
  0x29   : > { %s1794_s27 = scalar_lea.vmem %s1793_s4, 2048  ;;  %p1795_p10 = scmp.lt.s32.totalorder %s173_s8, %s1793_s4 }
  0x2a   : > { %p1790_p4 = pnand %p1788_p6, %p1748_p2  ;;  %p1796_p1 = scmp.lt.s32.totalorder %s1794_s27, %s1787_s16 }
  0x2c   : > { %p1791_p7 = pneg %p1790_p4  ;;  %p1797_p13 = por %p1796_p1, %p1795_p10 }
  0x2e   : > { %p1798_p3 = pnand %p1797_p13, %p1791_p7 }
  0x30   : > { %1801 = shalt.err (!%p1798_p3)
}
  0x31   : > { %1676 = dma.hbm_to_vmem [thread:$0]  (!%p1987_p0), %s171_s29, 1024, %s173_s8, %s159_s15, %s1889_s18, %s1889_s18, %s1890_s19  }
  0x32   : > { %184 = sbr.rel (%p2008_p5) target bundleno = 374 (0x176), region = 28  ;;  %s2023_s25 = sand.u32 (!%p2008_p5), 1, %s1870_s10  }
  0x33   : > { %s1499_s26 = sshll.u32 (!%p2008_p5), %s2023_s25, 6  ;;  %s187_s6 = scalar_lea.sflag (!%p2008_p5), [#allocation6], %s2023_s25 }
  0x34   : > { %s2027_s20 = scalar_lea.vmem (!%p2008_p5), [#allocation5], %s1499_s26 }
  0x37   : > { %1853 = dma.done.wait (%p1956_p8), %s187_s6, 1024  }
  0x38   : > { %1855 = vsyncadd (%p1956_p8), %s187_s6, 4294966272  ;;  %s196_s5 = scalar_lea.sflag [#allocation9], %s2023_s25  ;;  %s2034_s18 = scalar_lea.vmem [#allocation8], %s1499_s26 }
  0x39   : > { %1857 = dma.done.wait (%p1956_p8), %s196_s5, 1024  }
  0x3a   : > { %1859 = vsyncadd (%p1956_p8), %s196_s5, 4294966272  ;;  %vm231_vm0 = vcmask 130048   ;;  %v234_v0 = vlaneseq  ;;  %v1892_v1 = vmov 0.0   ;;  %v2043_v8 = vld [vmem:[%s2027_s20] sm:$0xff]  ;;  %v2065_v13 = vld [vmem:[%s2027_s20 + $0x8] sm:$0xff]  ;;  %s1527_s21 = sshll.u32 %s1878_s12, 4 }
  0x3b   : > { %232 = vst.msk [vmem:[#allocation4] sm:$0xff] %vm231_vm0, %v1892_v1  ;;  %233 = vst.msk [vmem:[#allocation4 + $0x8] sm:$0xff] %vm231_vm0, %v1892_v1  ;;  %v2046_v9 = vld [vmem:[%s2034_s18] sm:$0xff]  ;;  %1584 = vmatprep.mubr.msk.f32.mxu0 %vm231_vm0, %v2043_v8  ;;  %v2068_v14 = vld [vmem:[%s2034_s18 + $0x8] sm:$0xff]  ;;  %s223_s19 = scalar_lea.vmem [#allocation10], %s2023_s25  ;;  %vm1370_vm15 = vcmask 122880   ;;  %s1383_s7 = scalar_lea.hbm %s2298_s2, %s1527_s21 }
  0x3c   : > { %v235_v2 = vshrl.u32 %v234_v0, 7  ;;  %v238_v3 = vand.u32 127, %v234_v0  ;;  %1591 = vmatprep.mubr.msk.f32.mxu1 %vm231_vm0, %v2046_v9  ;;  %v2085_v16 = vld [vmem:[%s2027_s20 + $0x10] sm:$0xff]  ;;  %v2092_v18 = vld [vmem:[%s2027_s20 + $0x18] sm:$0xff]  ;;  %v2129_v21 = vld [vmem:[%s2027_s20 + $0x20] sm:$0xff]  ;;  %s1385_s28 = sshll.u32 %s223_s19, 4  ;;  %s1386_s28 = int_to_ptr.vmem [resolvable:$true] %s1385_s28 }
  0x3d   : > { %v2098_v19 = vld [vmem:[%s2034_s18 + $0x18] sm:$0xff]  ;;  %v2108_v20 = vld [vmem:[%s2034_s18 + $0x10] sm:$0xff]  ;;  %v2134_v22 = vld [vmem:[%s2034_s18 + $0x20] sm:$0xff]  ;;  %s1373_s8 = scalar_lea.sflag [#allocation7], %s2023_s25  ;;  %s1802_s15 = scalar_lea.vmem %s1386_s28, 16 }
  0x3e   : > { %v236_v4 = vadd.s32 8, %v235_v2  ;;  %v239_v5 = vadd.s32 %v238_v3, %v235_v2  ;;  %v2139_v23 = vld [vmem:[%s2027_s20 + $0x28] sm:$0xff]  ;;  %v2159_v25 = vld [vmem:[%s2027_s20 + $0x30] sm:$0xff]  ;;  %v2164_v26 = vld [vmem:[%s2027_s20 + $0x38] sm:$0xff]  ;;  %p1803_p8 = scmp.ne.s32.totalorder %s1386_s28, %s1802_s15  ;;  %s1893_s16 = smov [#allocation10]  }
  0x3f   : > { %v2142_v24 = vld [vmem:[%s2034_s18 + $0x28] sm:$0xff]  ;;  %v2170_v27 = vld [vmem:[%s2034_s18 + $0x38] sm:$0xff]  ;;  %v2180_v28 = vld [vmem:[%s2034_s18 + $0x30] sm:$0xff]  ;;  %s1806_s30 = sshll.u32 %s1893_s16, 4  ;;  %s1807_s30 = int_to_ptr.vmem [resolvable:$false] %s1806_s30 }
  0x40   : > { %v240_v6 = vadd.s32 %v238_v3, %v236_v4  ;;  %vm241_vm1 = vcmp.eq.s32.totalorder %v239_v5, 15  ;;  %p1804_p0 = pnand %p1803_p8, %p1960_p9  ;;  %s1808_s12 = scalar_lea.vmem %s1807_s30, 32 }
  0x41   : > { %v1501_v7 = vsel %vm241_vm1, 1.0, %v1892_v1  ;;  %p1809_p5 = scmp.lt.s32.totalorder %s1386_s28, %s1807_s30  ;;  %p1810_p6 = scmp.lt.s32.totalorder %s1808_s12, %s1802_s15 }
  0x42   : > { %vm242_vm2 = vcmp.eq.s32.totalorder %v240_v6, 15  ;;  %247 = vst.msk [vmem:[#allocation2] sm:$0xff] %vm231_vm0, %v1501_v7  ;;  %249 = vst.msk [vmem:[#allocation3] sm:$0xff] %vm231_vm0, %v1501_v7  ;;  %p1805_p2 = pneg %p1804_p0 }
  0x43   : > { %v1502_v10 = vsel %vm242_vm2, 1.0, %v1892_v1  ;;  %p1811_p4 = por %p1810_p6, %p1809_p5 }
  0x44   : > { %248 = vst.msk [vmem:[#allocation2 + $0x8] sm:$0xff] %vm231_vm0, %v1502_v10  ;;  %250 = vst.msk [vmem:[#allocation3 + $0x8] sm:$0xff] %vm231_vm0, %v1502_v10 }
  0x45   : > { %p1812_p7 = pnand %p1811_p4, %p1805_p2 }
  0x49   : > { %v2058_v12 = vld [vmem:[#allocation2] sm:$0xff]  ;;  %v2080_v15 = vld [vmem:[#allocation3] sm:$0xff] }
  0x4b   : > { %v2056_v11 = vld [vmem:[#allocation2 + $0x8] sm:$0xff]  ;;  %v2089_v17 = vld [vmem:[#allocation3 + $0x8] sm:$0xff] }
  0x4c   : > { %1580 = vmatprep.subr.mxu0 %v2056_v11  ;;  %1587 = vmatprep.subr.mxu1 %v2056_v11 }
  0x4d   : > { %1581 = vmatpush3.msra.mxu0 %v2056_v11  ;;  %1588 = vmatpush3.msra.mxu1 %v2056_v11 }
  0x4e   : > { %1582 = vmatprep.subr.mxu0 %v2058_v12  ;;  %1589 = vmatprep.subr.mxu1 %v2058_v12 }
  0x4f   : > { %1583 = vmatpush3.msra.mxu0 %v2058_v12  ;;  %1590 = vmatpush3.msra.mxu1 %v2058_v12 }
  0x50   : > { %1585 = vmatmul.mubr.msk.f32.vlgmr.msra.gmra.mxu0 %vm231_vm0, %v2065_v13  ;;  %1592 = vmatmul.mubr.msk.f32.vlgmr.msra.gmra.mxu1 %vm231_vm0, %v2068_v14 }
  0x51   : > { %1594 = vmatprep.subr.mxu0 %v2068_v14  ;;  %1601 = vmatprep.subr.mxu1 %v2056_v11 }
  0x52   : > { %1595 = vmatpush3.msra.mxu0 %v2068_v14  ;;  %1602 = vmatpush3.msra.mxu1 %v2056_v11 }
  0x53   : > { %1596 = vmatprep.subr.mxu0 %v2046_v9  ;;  %1603 = vmatprep.subr.mxu1 %v2058_v12 }
  0x54   : > { %1597 = vmatpush3.msra.mxu0 %v2046_v9  ;;  %1598 = vmatprep.mubr.msk.f32.mxu0 %vm231_vm0, %v2080_v15 }
  0x55   : > { %1604 = vmatpush3.msra.mxu1 %v2058_v12  ;;  %1605 = vmatprep.mubr.msk.f32.mxu1 %vm231_vm0, %v2085_v16 }
  0x56   : > { %1599 = vmatmul.mubr.msk.f32.vlgmr.msra.gmra.mxu0 %vm231_vm0, %v2089_v17  ;;  %1606 = vmatmul.mubr.msk.f32.vlgmr.msra.gmra.mxu1 %vm231_vm0, %v2092_v18 }
  0x57   : > { %1608 = vmatprep.subr.mxu0 %v2056_v11  ;;  %1615 = vmatprep.subr.mxu1 %v2098_v19 }
  0x58   : > { %1609 = vmatpush3.msra.mxu0 %v2056_v11  ;;  %1616 = vmatpush3.msra.mxu1 %v2098_v19 }
  0x59   : > { %1610 = vmatprep.subr.mxu0 %v2058_v12  ;;  %1617 = vmatprep.subr.mxu1 %v2108_v20 }
  0x5a   : > { %1611 = vmatpush3.msra.mxu0 %v2058_v12  ;;  %1612 = vmatprep.mubr.msk.f32.mxu0 %vm231_vm0, %v2108_v20 }
  0x5b   : > { %1618 = vmatpush3.msra.mxu1 %v2108_v20  ;;  %1619 = vmatprep.mubr.msk.f32.mxu1 %vm231_vm0, %v2080_v15 }
  0x5c   : > { %1613 = vmatmul.mubr.msk.f32.vlgmr.msra.gmra.mxu0 %vm231_vm0, %v2098_v19  ;;  %1620 = vmatmul.mubr.msk.f32.vlgmr.msra.gmra.mxu1 %vm231_vm0, %v2089_v17 }
  0x5d   : > { %1622 = vmatprep.subr.mxu0 %v2056_v11  ;;  %1629 = vmatprep.subr.mxu1 %v2056_v11 }
  0x5e   : > { %1623 = vmatpush3.msra.mxu0 %v2056_v11  ;;  %1630 = vmatpush3.msra.mxu1 %v2056_v11 }
  0x5f   : > { %1624 = vmatprep.subr.mxu0 %v2058_v12  ;;  %1631 = vmatprep.subr.mxu1 %v2058_v12 }
  0x60   : > { %1625 = vmatpush3.msra.mxu0 %v2058_v12  ;;  %1626 = vmatprep.mubr.msk.f32.mxu0 %vm231_vm0, %v2129_v21 }
  0x61   : > { %1632 = vmatpush3.msra.mxu1 %v2058_v12  ;;  %1633 = vmatprep.mubr.msk.f32.mxu1 %vm231_vm0, %v2134_v22 }
  0x62   : > { %1627 = vmatmul.mubr.msk.f32.vlgmr.msra.gmra.mxu0 %vm231_vm0, %v2139_v23  ;;  %1634 = vmatmul.mubr.msk.f32.vlgmr.msra.gmra.mxu1 %vm231_vm0, %v2142_v24 }
  0x63   : > { %1636 = vmatprep.subr.mxu0 %v2142_v24  ;;  %1643 = vmatprep.subr.mxu1 %v2056_v11 }
  0x64   : > { %1637 = vmatpush3.msra.mxu0 %v2142_v24  ;;  %1644 = vmatpush3.msra.mxu1 %v2056_v11 }
  0x65   : > { %1638 = vmatprep.subr.mxu0 %v2134_v22  ;;  %1645 = vmatprep.subr.mxu1 %v2058_v12 }
  0x66   : > { %1639 = vmatpush3.msra.mxu0 %v2134_v22  ;;  %1640 = vmatprep.mubr.msk.f32.mxu0 %vm231_vm0, %v2080_v15 }
  0x67   : > { %1646 = vmatpush3.msra.mxu1 %v2058_v12  ;;  %1647 = vmatprep.mubr.msk.f32.mxu1 %vm231_vm0, %v2159_v25 }
  0x68   : > { %1641 = vmatmul.mubr.msk.f32.vlgmr.msra.gmra.mxu0 %vm231_vm0, %v2089_v17  ;;  %1648 = vmatmul.mubr.msk.f32.vlgmr.msra.gmra.mxu1 %vm231_vm0, %v2164_v26 }
  0x69   : > { %1650 = vmatprep.subr.mxu0 %v2056_v11  ;;  %1657 = vmatprep.subr.mxu1 %v2170_v27 }
  0x6a   : > { %1651 = vmatpush3.msra.mxu0 %v2056_v11  ;;  %1658 = vmatpush3.msra.mxu1 %v2170_v27 }
  0x6b   : > { %1652 = vmatprep.subr.mxu0 %v2058_v12  ;;  %1659 = vmatprep.subr.mxu1 %v2180_v28 }
  0x6c   : > { %1653 = vmatpush3.msra.mxu0 %v2058_v12  ;;  %1654 = vmatprep.mubr.msk.f32.mxu0 %vm231_vm0, %v2180_v28 }
  0x6d   : > { %1660 = vmatpush3.msra.mxu1 %v2180_v28  ;;  %1661 = vmatprep.mubr.msk.f32.mxu1 %vm231_vm0, %v2080_v15 }
  0x6e   : > { %1655 = vmatmul.mubr.msk.f32.vlgmr.msra.gmra.mxu0 %vm231_vm0, %v2170_v27  ;;  %1662 = vmatmul.mubr.msk.f32.vlgmr.msra.gmra.mxu1 %vm231_vm0, %v2089_v17 }
 0x110   : > { %v1586_v29 = vpop.f32.mrf.mxu0  ;;  %v1593_v30 = vpop.f32.mrf.mxu1 }
 0x111   : > { %v354_v42 = vsub.f32 %v1586_v29, %v2065_v13  ;;  %v437_v54 = vsub.f32 %v1593_v30, %v2068_v14 }
 0x112   : > { %v344_v31 = vpop.f32.mrf.mxu0  ;;  %v427_v32 = vpop.f32.mrf.mxu1 }
 0x113   : > { %v353_v45 = vsub.f32 %v344_v31, %v2043_v8  ;;  %v522_v53 = vmul.f32 %v354_v42, %v354_v42  ;;  %v436_v57 = vsub.f32 %v427_v32, %v2046_v9  ;;  %v526_v17 = vmul.f32 %v437_v54, %v437_v54 }
 0x115   : > { %v521_v56 = vmul.f32 %v353_v45, %v353_v45 }
 0x116   : > { %v1600_v33 = vpop.f32.mrf.mxu0  ;;  %v1607_v34 = vpop.f32.mrf.mxu1 }
 0x117   : > { %v615_v41 = vsub.f32 %v1607_v34, %v2092_v18  ;;  %v520_v60 = vsub.f32 %v1600_v33, %v2065_v13 }
 0x118   : > { %v510_v35 = vpop.f32.mrf.mxu0  ;;  %v605_v36 = vpop.f32.mrf.mxu1 }
 0x119   : > { %v777_v47 = vmul.f32 %v615_v41, %v615_v41  ;;  %v614_v48 = vsub.f32 %v605_v36, %v2085_v16  ;;  %v519_v62 = vsub.f32 %v510_v35, %v2043_v8 }
 0x11b   : > { %v779_v61 = vadd.f32 %v777_v47, %v522_v53  ;;  %v776_v63 = vmul.f32 %v614_v48, %v614_v48  ;;  %v529_v35 = vmul.f32 %v519_v62, %v519_v62 }
 0x11c   : > { %v1614_v37 = vpop.f32.mrf.mxu0  ;;  %v1621_v38 = vpop.f32.mrf.mxu1 }
 0x11d   : > { %v698_v51 = vsub.f32 %v1614_v37, %v2098_v19  ;;  %v775_v52 = vsub.f32 %v1621_v38, %v2092_v18  ;;  %v525_v18 = vmul.f32 %v436_v57, %v436_v57  ;;  %v778_v19 = vadd.f32 %v776_v63, %v521_v56 }
 0x11e   : > { %v688_v39 = vpop.f32.mrf.mxu0  ;;  %v765_v40 = vpop.f32.mrf.mxu1 }
 0x11f   : > { %v697_v58 = vsub.f32 %v688_v39, %v2108_v20  ;;  %v781_v2 = vmul.f32 %v698_v51, %v698_v51  ;;  %v785_v3 = vmul.f32 %v775_v52, %v775_v52  ;;  %v774_v4 = vsub.f32 %v765_v40, %v2085_v16 }
 0x120   : > { %v530_v20 = vmul.f32 %v520_v60, %v520_v60 }
 0x121   : > { %v780_v13 = vmul.f32 %v697_v58, %v697_v58  ;;  %v784_v29 = vmul.f32 %v774_v4, %v774_v4  ;;  %v783_v36 = vadd.f32 %v781_v2, %v526_v17 }
 0x122   : > { %v1628_v43 = vpop.f32.mrf.mxu0  ;;  %v1635_v44 = vpop.f32.mrf.mxu1  ;;  %v787_v37 = vadd.f32 %v785_v3, %v530_v20 }
 0x123   : > { %v870_v46 = vsub.f32 %v1628_v43, %v2139_v23  ;;  %v953_v6 = vsub.f32 %v1635_v44, %v2142_v24  ;;  %v782_v38 = vadd.f32 %v780_v13, %v525_v18  ;;  %v786_v44 = vadd.f32 %v784_v29, %v529_v35 }
 0x124   : > { %v860_v49 = vpop.f32.mrf.mxu0  ;;  %v943_v50 = vpop.f32.mrf.mxu1 }
 0x125   : > { %v869_v55 = vsub.f32 %v860_v49, %v2129_v21  ;;  %v1032_v59 = vmul.f32 %v870_v46, %v870_v46  ;;  %v952_v9 = vsub.f32 %v943_v50, %v2134_v22  ;;  %v1036_v22 = vmul.f32 %v953_v6, %v953_v6 }
 0x127   : > { %v1031_v7 = vmul.f32 %v869_v55, %v869_v55  ;;  %v1034_v8 = vadd.f32 %v1032_v59, %v779_v61  ;;  %v1038_v47 = vadd.f32 %v1036_v22, %v783_v36 }
 0x128   : > { %v1642_v0 = vpop.f32.mrf.mxu0  ;;  %v1649_v1 = vpop.f32.mrf.mxu1 }
 0x129   : > { %v1125_v5 = vsub.f32 %v1649_v1, %v2164_v26  ;;  %v1030_v10 = vsub.f32 %v1642_v0, %v2139_v23  ;;  %v1033_v31 = vadd.f32 %v1031_v7, %v778_v19  ;;  %v1035_v23 = vmul.f32 %v952_v9, %v952_v9 }
 0x12a   : > { %v1020_v11 = vpop.f32.mrf.mxu0  ;;  %v1115_v12 = vpop.f32.mrf.mxu1 }
 0x12b   : > { %v1287_v14 = vmul.f32 %v1125_v5, %v1125_v5  ;;  %v1124_v15 = vsub.f32 %v1115_v12, %v2159_v25  ;;  %v1029_v16 = vsub.f32 %v1020_v11, %v2129_v21  ;;  %v1040_v32 = vmul.f32 %v1030_v10, %v1030_v10 }
 0x12c   : > { %v1037_v48 = vadd.f32 %v1035_v23, %v782_v38  ;;  %v1348_v23 = vld [vmem:[#allocation4 + $0x8] sm:$0xff] }
 0x12d   : > { %v2218_v24 = vadd.f32 %v1287_v14, %v1034_v8  ;;  %v1286_v30 = vmul.f32 %v1124_v15, %v1124_v15  ;;  %v1039_v39 = vmul.f32 %v1029_v16, %v1029_v16  ;;  %v1042_v49 = vadd.f32 %v1040_v32, %v787_v37 }
 0x12e   : > { %v1656_v33 = vpop.f32.mrf.mxu0  ;;  %v1663_v34 = vpop.f32.mrf.mxu1 }
 0x12f   : > { %v2220_v40 = vadd.f32 %v1286_v30, %v1033_v31  ;;  %v1208_v21 = vsub.f32 %v1656_v33, %v2170_v27  ;;  %v1285_v41 = vsub.f32 %v1663_v34, %v2164_v26  ;;  %1734 = vrsqrt.f32 %v2218_v24  ;;  %v1347_v34 = vld [vmem:[#allocation4] sm:$0xff] }
 0x130   : > { %v1198_v42 = vpop.f32.mrf.mxu0  ;;  %v1275_v43 = vpop.f32.mrf.mxu1  ;;  %v1041_v53 = vadd.f32 %v1039_v39, %v786_v44  ;;  %vm1307_vm3 = vcmp.eq.f32.partialorder %v2218_v24, inf  ;;  %vm1309_vm4 = vcmp.eq.f32.partialorder %v2218_v24, 0.0  ;;  %v1310_v58 = vand.u32 2147483648, %v2218_v24 }
 0x131   : > { %v1207_v45 = vsub.f32 %v1198_v42, %v2180_v28  ;;  %v1284_v46 = vsub.f32 %v1275_v43, %v2159_v25  ;;  %1736 = vrsqrt.f32 %v2220_v40  ;;  %v1291_v50 = vmul.f32 %v1208_v21, %v1208_v21 }
 0x132   : > { %v1295_v51 = vmul.f32 %v1285_v41, %v1285_v41  ;;  %vm1300_vm5 = vcmp.eq.f32.partialorder %v2220_v40, inf  ;;  %vm1302_vm6 = vcmp.eq.f32.partialorder %v2220_v40, 0.0  ;;  %v1303_v60 = vand.u32 2147483648, %v2220_v40 }
 0x133   : > { %v1290_v52 = vmul.f32 %v1207_v45, %v1207_v45  ;;  %v1294_v27 = vmul.f32 %v1284_v46, %v1284_v46  ;;  %v1293_v26 = vadd.f32 %v1291_v50, %v1038_v47 }
 0x134   : > { %v1297_v54 = vadd.f32 %v1295_v51, %v1042_v49 }
 0x135   : > { %v1292_v55 = vadd.f32 %v1290_v52, %v1037_v48  ;;  %v1296_v56 = vadd.f32 %v1294_v27, %v1041_v53  ;;  %1738 = vrsqrt.f32 %v1293_v26  ;;  %vm1321_vm7 = vcmp.eq.f32.partialorder %v1293_v26, inf }
 0x136   : > { %1740 = vrsqrt.f32 %v1297_v54  ;;  %vm1323_vm8 = vcmp.eq.f32.partialorder %v1293_v26, 0.0  ;;  %v1324_v62 = vand.u32 2147483648, %v1293_v26  ;;  %vm1337_vm9 = vcmp.eq.f32.partialorder %v1297_v54, inf }
 0x137   : > { %1742 = vrsqrt.f32 %v1292_v55  ;;  %vm1339_vm10 = vcmp.eq.f32.partialorder %v1297_v54, 0.0  ;;  %v1340_v2 = vand.u32 2147483648, %v1297_v54  ;;  %vm1314_vm11 = vcmp.eq.f32.partialorder %v1292_v55, inf }
 0x138   : > { %1744 = vrsqrt.f32 %v1296_v56  ;;  %vm1316_vm12 = vcmp.eq.f32.partialorder %v1292_v55, 0.0  ;;  %v1317_v5 = vand.u32 2147483648, %v1292_v55  ;;  %vm1330_vm13 = vcmp.eq.f32.partialorder %v1296_v56, inf }
 0x139   : > { %vm1332_vm14 = vcmp.eq.f32.partialorder %v1296_v56, 0.0  ;;  %v1333_v18 = vand.u32 2147483648, %v1296_v56 }
 0x13c   : > { %v1735_v28 = vpop.eup %1734 }
 0x13d   : > { %v1306_v57 = vmul.f32 %v1735_v28, %v2218_v24 }
 0x13e   : > { %v1737_v25 = vpop.eup %1736 }
 0x13f   : > { %v1299_v59 = vmul.f32 %v1737_v25, %v2220_v40  ;;  %v1308_v0 = vsel %vm1307_vm3, %v2218_v24, %v1306_v57 }
 0x140   : > { %v1311_v11 = vsel %vm1309_vm4, %v1310_v58, %v1308_v0 }
 0x141   : > { %v1301_v7 = vsel %vm1300_vm5, %v2220_v40, %v1299_v59 }
 0x142   : > { %v1739_v61 = vpop.eup %1738  ;;  %v1304_v19 = vsel %vm1302_vm6, %v1303_v60, %v1301_v7 }
 0x143   : > { %v1741_v63 = vpop.eup %1740  ;;  %v1320_v1 = vmul.f32 %v1739_v61, %v1293_v26 }
 0x144   : > { %v1743_v3 = vpop.eup %1742  ;;  %v1336_v4 = vmul.f32 %v1741_v63, %v1297_v54 }
 0x145   : > { %v1745_v6 = vpop.eup %1744  ;;  %v1322_v9 = vsel %vm1321_vm7, %v1293_v26, %v1320_v1  ;;  %v1313_v10 = vmul.f32 %v1743_v3, %v1292_v55 }
 0x146   : > { %v1325_v12 = vsel %vm1323_vm8, %v1324_v62, %v1322_v9  ;;  %v1338_v13 = vsel %vm1337_vm9, %v1297_v54, %v1336_v4  ;;  %v1329_v8 = vmul.f32 %v1745_v6, %v1296_v56 }
 0x147   : > { %v1327_v14 = vadd.f32 %v1325_v12, %v1311_v11  ;;  %v1341_v15 = vsel %vm1339_vm10, %v1340_v2, %v1338_v13  ;;  %v1315_v17 = vsel %vm1314_vm11, %v1292_v55, %v1313_v10 }
 0x148   : > { %v1343_v16 = vmul.f32 2.0, %v1341_v15  ;;  %v1318_v20 = vsel %vm1316_vm12, %v1317_v5, %v1315_v17  ;;  %v1331_v29 = vsel %vm1330_vm13, %v1296_v56, %v1329_v8 }
 0x149   : > { %v1326_v24 = vadd.f32 %v1318_v20, %v1304_v19  ;;  %v1334_v30 = vsel %vm1332_vm14, %v1333_v18, %v1331_v29 }
 0x14a   : > { %v1345_v22 = vadd.f32 %v1343_v16, %v1327_v14  ;;  %v1342_v31 = vmul.f32 2.0, %v1334_v30 }
 0x14c   : > { %v1351_v32 = vmul.f32 0.5, %v1345_v22  ;;  %v1344_v33 = vadd.f32 %v1342_v31, %v1326_v24 }
 0x14e   : > { %v1353_v35 = vadd.f32 %v1351_v32, %v1348_v23  ;;  %v1350_v36 = vmul.f32 0.5, %v1344_v33 }
 0x150   : > { %1355 = vst.msk [vmem:[#allocation4 + $0x8] sm:$0xff] %vm231_vm0, %v1353_v35  ;;  %v1352_v37 = vadd.f32 %v1350_v36, %v1347_v34 }
 0x152   : > { %1354 = vst.msk [vmem:[#allocation4] sm:$0xff] %vm231_vm0, %v1352_v37 }
 0x157   : > { %v1360_v38 = vld [vmem:[#allocation4 + $0x8] sm:$0xff] }
 0x158   : > { %v1362_v21 = vsel %vm231_vm0, %v1360_v38, 0.0 }
 0x159   : > { %v1359_v39 = vld [vmem:[#allocation4] sm:$0xff] }
 0x15a   : > { %v1361_v40 = vsel %vm231_vm0, %v1359_v39, 0.0 }
 0x15b   : > { %v1363_v41 = vadd.f32 %v1362_v21, %v1361_v40 }
 0x15d   : > { %v1364_v42 = vrot.slane %v1363_v41, 4 }
 0x15f   : > { %v1365_v43 = vadd.f32 %v1364_v42, %v1363_v41 }
 0x161   : > { %v1366_v44 = vrot.slane %v1365_v43, 2 }
 0x163   : > { %v1367_v45 = vadd.f32 %v1366_v44, %v1365_v43 }
 0x165   : > { %v1368_v46 = vrot.slane %v1367_v45, 1 }
 0x167   : > { %v1369_v47 = vadd.f32 %v1368_v46, %v1367_v45 }
 0x169   : > { %1371 = vst.msk [vmem:[%s223_s19] sm:$0x1] %vm1370_vm15, %v1369_v47 }
 0x16a   : > { %1815 = shalt.err (!%p1812_p7)
}
 0x16b   : > { %s1816_s4 = scalar_lea.hbm %s1383_s7, 16  ;;  %s1820_s26 = scalar_lea.hbm %s2298_s2, 32 }
 0x16c   : > { %p1817_p10 = scmp.ne.s32.totalorder %s1383_s7, %s1816_s4  ;;  %p1821_p3 = scmp.lt.s32.totalorder %s1383_s7, %s2298_s2 }
 0x16d   : > { %p1822_p8 = scmp.lt.s32.totalorder %s1820_s26, %s1816_s4 }
 0x16e   : > { %p1818_p1 = pnand %p1817_p10, %p1960_p9 }
 0x16f   : > { %p1823_p0 = por %p1822_p8, %p1821_p3 }
 0x170   : > { %p1819_p13 = pneg %p1818_p1 }
 0x172   : > { %p1824_p12 = pnand %p1823_p0, %p1819_p13 }
 0x174   : > { %1827 = shalt.err (!%p1824_p12)
}
 0x175   : > { %1668 = dma.vmem_to_hbm [thread:$0]  (%p1960_p9), %s1386_s28, 16, %s1383_s7, %s1373_s8  }
 0x176 PF: > { %s1397_s5 = sand.u32 1, %s1866_s9   ;;  %p2305_p2 = scmp.ge.s32.totalorder %s1886_s14, 2 }
 0x177   : > { %s1398_s18 = scalar_lea.sflag [#allocation7], %s1397_s5 }
 0x178   : > { %p1678_p5 = pnand %p2305_p2, %p1967_p11 }
 0x17a   : > { %p1679_p6 = pneg %p1678_p5 }
 0x17c   : > { %1861 = dma.done.wait (%p1679_p6), %s1398_s18, 16  }
 0x17d   : > { %1863 = vsyncadd (%p1679_p6), %s1398_s18, 4294967280  ;;  %s21_s14 = sadd.s32 1, %s1886_s14   ;;  %s2306_s9 = smov %s1870_s10 }
 0x17e   : > { %p18_p4 = scmp.ge.s32.totalorder %s21_s14, 4   ;;  %s2307_s10 = smov %s1874_s11 }
 0x17f   : > { %s2308_s11 = smov %s1965_s23  ;;  %s2309_s12 = smov %s1882_s13 }
 0x180   : > { %s2310_s13 = smov %s2312_s17  ;;  %20 = sbr.rel (!%p18_p4) target bundleno = 8 (0x8), region = 94 }
 0x185   :  { %1402 = vsyncpa [#allocation6], 1 }
 0x186   :  { %1404 = vsyncpa [#allocation6 + $0x1], 1 }
 0x187   :  { %1405 = vsyncpa [#allocation9], 1 }
 0x188   :  { %1407 = vsyncpa [#allocation9 + $0x1], 1 }
 0x189   :  { %1408 = vsyncpa [#allocation7], 1 }
 0x18a   :  { %1410 = vsyncpa [#allocation7 + $0x1], 1 }

</bundles_post_ra>
